<compile_context>
chip_gen: v7x
topology: tpu7x:2x2x1
jax: 0.10.0
libtpu: 0.0.40
codegen_flags: <defaults>
</compile_context>

<pallas_src>
import math

import jax
import jax.numpy as jnp
from jax import lax
from jax.experimental import pallas as pl
from jax.experimental.pallas import tpu as pltpu

EPS = 1e-5  # nn.BatchNorm2d default eps


# ----------------------------- Pallas kernels ------------------------------

def _mm_bias_kernel(x_ref, w_ref, b_ref, o_ref, acc_ref):
    """out[i,j] = sum_k x[i,k] @ w[k,j] + bias[j]   (K accumulated over grid)."""
    @pl.when(pl.program_id(2) == 0)
    def _():
        acc_ref[...] = jnp.zeros_like(acc_ref)

    acc_ref[...] += jnp.dot(x_ref[...], w_ref[...],
                            preferred_element_type=jnp.float32)

    @pl.when(pl.program_id(2) == pl.num_programs(2) - 1)
    def _():
        o_ref[...] = (acc_ref[...] + b_ref[...]).astype(o_ref.dtype)


def _mm_bias_res_kernel(x_ref, w_ref, b_ref, res_ref, o_ref, acc_ref):
    """out = x @ w + bias + residual   (series_adapters: conv(bn(x)) + x)."""
    @pl.when(pl.program_id(2) == 0)
    def _():
        acc_ref[...] = jnp.zeros_like(acc_ref)

    acc_ref[...] += jnp.dot(x_ref[...], w_ref[...],
                            preferred_element_type=jnp.float32)

    @pl.when(pl.program_id(2) == pl.num_programs(2) - 1)
    def _():
        o_ref[...] = (acc_ref[...] + b_ref[...]
                      + res_ref[...].astype(jnp.float32)).astype(o_ref.dtype)


# ----------------------------- kernel wrapper -------------------------------

def _round_up(x, m):
    return (x + m - 1) // m * m


def _pad2d(a, rows, cols):
    pr, pc = rows - a.shape[0], cols - a.shape[1]
    if pr == 0 and pc == 0:
        return a
    return jnp.pad(a, ((0, pr), (0, pc)))


def matmul_bias(x, w, bias, residual=None, *, tm=256, tn=128, tk=512):
    """Tiled Pallas matmul:  out = x @ w + bias (+ residual).

    x: (M, K) f32, w: (K, N) f32, bias: (N,) f32, residual: (M, N) f32 or None.
    x / w are cast to bf16 (MXU path); accumulation and epilogue are f32.
    Operands are zero-padded to lane-dense tile multiples; the output is sliced
    back to (M, N) f32.
    """
    M, K = x.shape
    Kw, N = w.shape
    assert K == Kw and bias.shape == (N,)

    tm = min(tm, _round_up(M, 8))
    tk = min(tk, _round_up(K, 128))
    tn = min(tn, _round_up(N, 128))
    Mp, Kp, Np = _round_up(M, tm), _round_up(K, tk), _round_up(N, tn)

    xp = _pad2d(x, Mp, Kp).astype(jnp.bfloat16)
    wp = _pad2d(w, Kp, Np).astype(jnp.bfloat16)
    bp = _pad2d(bias.reshape(1, N).astype(jnp.float32), 1, Np)

    grid = (Mp // tm, Np // tn, Kp // tk)
    in_specs = [
        pl.BlockSpec((tm, tk), lambda i, j, k: (i, k)),
        pl.BlockSpec((tk, tn), lambda i, j, k: (k, j)),
        pl.BlockSpec((1, tn), lambda i, j, k: (0, j)),
    ]
    operands = [xp, wp, bp]
    kernel = _mm_bias_kernel
    if residual is not None:
        assert residual.shape == (M, N)
        in_specs.append(pl.BlockSpec((tm, tn), lambda i, j, k: (i, j)))
        operands.append(_pad2d(residual, Mp, Np).astype(jnp.float32))
        kernel = _mm_bias_res_kernel

    # double-buffered inputs/outputs + f32 accumulator, with generous headroom
    in_bytes = tm * tk * 2 + tk * tn * 2 + tn * 4
    if residual is not None:
        in_bytes += tm * tn * 4
    est = 2 * (in_bytes + tm * tn * 4) + tm * tn * 4
    vmem_limit = int(min(max(4 * est, 8 << 20), 32 << 20))

    out = pl.pallas_call(
        kernel,
        out_shape=jax.ShapeDtypeStruct((Mp, Np), jnp.float32),
        grid=grid,
        in_specs=in_specs,
        out_specs=pl.BlockSpec((tm, tn), lambda i, j, k: (i, j)),
        scratch_shapes=[pltpu.VMEM((tm, tn), jnp.float32)],
        compiler_params=pltpu.CompilerParams(
            dimension_semantics=("parallel", "parallel", "arbitrary"),
            vmem_limit_bytes=vmem_limit,
        ),
    )(*operands)
    return out[:M, :N]


# ------------------------------- JAX glue -----------------------------------

def fold_bn(bn):
    """Eval-mode BatchNorm2d folded into per-channel (scale, bias)."""
    scale = bn["gamma"] * lax.rsqrt(bn["var"] + EPS)
    bias = bn["beta"] - bn["mean"] * scale
    return scale, bias


def conv1x1_forward(params, x_nchw, mode):
    """Forward of the PyTorch `conv1x1` module.

    x is NCHW like PyTorch; internally NHWC so channels sit on the lane axis.
    """
    x = jnp.transpose(x_nchw, (0, 2, 3, 1)).astype(jnp.float32)   # -> NHWC
    n, h, w_sp, cin = x.shape
    w = params["w"]                                               # (Cin, Cout)
    cout = w.shape[1]

    if mode == "series_adapters":
        # y = conv1x1(BN(x)) + x ; fold BN into the matmul:
        #   (x*s + b) @ W  ==  x @ (s[:,None]*W) + (b @ W)
        s, b = fold_bn(params["bn"])
        x2d = x.reshape(n * h * w_sp, cin)
        y2d = matmul_bias(x2d, w * s[:, None], b @ w, residual=x2d)
        y = y2d.reshape(n, h, w_sp, cout)
    elif mode == "parallel_adapters":
        stride = params["stride"]
        xs = x[:, ::stride, ::stride, :]           # 1x1 conv stride = subsample
        ns, hs, ws, _ = xs.shape
        y2d = matmul_bias(xs.reshape(ns * hs * ws, cin), w,
                          jnp.zeros((cout,), jnp.float32))
        y = y2d.reshape(ns, hs, ws, cout)
    else:
        y2d = matmul_bias(x.reshape(n * h * w_sp, cin), w,
                          jnp.zeros((cout,), jnp.float32))
        y = y2d.reshape(n, h, w_sp, cout)

    return jnp.transpose(y, (0, 3, 1, 2))                         # -> NCHW


def conv1x1_reference(params, x_nchw, mode):
    """Pure-JAX f32 reference of the same forward pass."""
    x = jnp.transpose(x_nchw, (0, 2, 3, 1)).astype(jnp.float32)
    w = params["w"]
    if mode == "series_adapters":
        s, b = fold_bn(params["bn"])
        y = jnp.einsum("nhwc,cd->nhwd", x * s + b, w) + x
    elif mode == "parallel_adapters":
        stride = params["stride"]
        y = jnp.einsum("nhwc,cd->nhwd", x[:, ::stride, ::stride, :], w)
    else:
        y = jnp.einsum("nhwc,cd->nhwd", x, w)
    return jnp.transpose(y, (0, 3, 1, 2))


# --------------------------- parameter construction -------------------------

def make_params(key, planes, out_planes=None, stride=1, mode="plain"):
    kw, kg, kb, km, kv = jax.random.split(key, 5)
    cout = out_planes if (mode == "parallel_adapters" and out_planes) else planes
    # PyTorch stores conv weights (Cout, Cin, 1, 1); kept here as (Cin, Cout).
    w = jax.random.normal(kw, (planes, cout), jnp.float32) * math.sqrt(2.0 / cout)
    params = {"w": w, "stride": stride}
    if mode == "series_adapters":
        params["bn"] = dict(
            gamma=jax.random.uniform(kg, (planes,), jnp.float32, 0.5, 1.5),
            beta=jax.random.normal(kb, (planes,), jnp.float32) * 0.1,
            mean=jax.random.normal(km, (planes,), jnp.float32) * 0.1,
            var=jax.random.uniform(kv, (planes,), jnp.float32, 0.5, 1.5),
        )
    return params


# ----------------------------------- main ------------------------------------

if __name__ == "__main__":
    key = jax.random.PRNGKey(0)
    kx, kp1, kp2, kp3 = jax.random.split(key, 4)

    planes = 64
    x = jax.random.normal(kx, (2, planes, 16, 16), jnp.float32)   # NCHW, like PyTorch

    # TODO(synk): config_task.mode is an external global; all three modes are
    # exercised explicitly here.
    cases = [
        ("series_adapters", make_params(kp1, planes, mode="series_adapters")),
        ("parallel_adapters", make_params(kp2, planes, out_planes=128, stride=2,
                                          mode="parallel_adapters")),
        ("plain", make_params(kp3, planes, mode="plain")),
    ]

    for mode, params in cases:
        y = conv1x1_forward(params, x, mode)
        jax.block_until_ready(y)
        y_ref = conv1x1_reference(params, x, mode)
        assert y.shape == y_ref.shape, (mode, y.shape, y_ref.shape)
        assert jnp.all(jnp.isfinite(y)), mode
        err = float(jnp.max(jnp.abs(y - y_ref)))
        assert err < 1e-1, (mode, err)        # bf16-matmul vs f32-reference tolerance

    print("KERNEL_OK")
</pallas_src>

<mosaic_0001>
module attributes {stable_mosaic.version = 11 : i64} {
  func.func @_mm_bias_res_kernel(%arg0: i32, %arg1: i32, %arg2: i32, %arg3: memref<256x128xbf16, #tpu.memory_space<vmem>>, %arg4: memref<128x128xbf16, #tpu.memory_space<vmem>>, %arg5: memref<1x128xf32, #tpu.memory_space<vmem>>, %arg6: memref<256x128xf32, #tpu.memory_space<vmem>>, %arg7: memref<256x128xf32, #tpu.memory_space<vmem>>, %arg8: memref<256x128xf32, #tpu.memory_space<vmem>>) attributes {dimension_semantics = [#tpu.dimension_semantics<parallel>, #tpu.dimension_semantics<parallel>, #tpu.dimension_semantics<arbitrary>], iteration_bounds = array<i64: 2, 1, 1>, scalar_prefetch = 0 : i64, scratch_operands = 1 : i64, tpu.core_type = #tpu.core_type<tc>, window_params = [{transform_indices = @transform_0, window_bounds = array<i64: 256, 128>}, {transform_indices = @transform_1, window_bounds = array<i64: 128, 128>}, {transform_indices = @transform_2, window_bounds = array<i64: 1, 128>}, {transform_indices = @transform_3, window_bounds = array<i64: 256, 128>}, {transform_indices = @transform_4, window_bounds = array<i64: 256, 128>}]} {
    %c0_i32 = arith.constant 0 : i32
    %0 = arith.cmpi eq, %arg2, %c0_i32 : i32
    %1 = arith.extui %0 : i1 to i32
    %c0_i32_0 = arith.constant 0 : i32
    %2 = arith.cmpi ne, %1, %c0_i32_0 : i32
    scf.if %2 {
      %cst_10 = arith.constant 0.000000e+00 : f32
      %12 = vector.broadcast %cst_10 : f32 to vector<256x128xf32>
      %c0_11 = arith.constant 0 : index
      %c0_12 = arith.constant 0 : index
      %13 = vector.load %arg8[%c0_11, %c0_12] : memref<256x128xf32, #tpu.memory_space<vmem>>, vector<256x128xf32>
      tpu.vector_store %arg8[%c0_11, %c0_12], %12 {strides = array<i32>} : memref<256x128xf32, #tpu.memory_space<vmem>>, vector<256x128xf32>,
    } else {
    }
    %c0 = arith.constant 0 : index
    %c0_1 = arith.constant 0 : index
    %3 = vector.load %arg8[%c0, %c0_1] : memref<256x128xf32, #tpu.memory_space<vmem>>, vector<256x128xf32>
    %c0_2 = arith.constant 0 : index
    %c0_3 = arith.constant 0 : index
    %4 = vector.load %arg3[%c0_2, %c0_3] : memref<256x128xbf16, #tpu.memory_space<vmem>>, vector<256x128xbf16>
    %c0_4 = arith.constant 0 : index
    %c0_5 = arith.constant 0 : index
    %5 = vector.load %arg4[%c0_4, %c0_5] : memref<128x128xbf16, #tpu.memory_space<vmem>>, vector<128x128xbf16>
    %cst = arith.constant dense<0.000000e+00> : vector<256x128xf32>
    %6 = tpu.matmul %4, %5, %cst {dimension_numbers = #tpu.dot_dimension_numbers<[1], [0], [0], [1], [0, 0, 1, 1], [], []>} : vector<256x128xbf16>, vector<128x128xbf16>, vector<256x128xf32> -> vector<256x128xf32>
    %7 = arith.addf %3, %6 : vector<256x128xf32>
    %c0_6 = arith.constant 0 : index
    %c0_7 = arith.constant 0 : index
    %8 = vector.load %arg8[%c0_6, %c0_7] : memref<256x128xf32, #tpu.memory_space<vmem>>, vector<256x128xf32>
    tpu.vector_store %arg8[%c0_6, %c0_7], %7 {strides = array<i32>} : memref<256x128xf32, #tpu.memory_space<vmem>>, vector<256x128xf32>,
    %c0_i32_8 = arith.constant 0 : i32
    %9 = arith.cmpi eq, %arg2, %c0_i32_8 : i32
    %10 = arith.extui %9 : i1 to i32
    %c0_i32_9 = arith.constant 0 : i32
    %11 = arith.cmpi ne, %10, %c0_i32_9 : i32
    scf.if %11 {
      %c0_10 = arith.constant 0 : index
      %c0_11 = arith.constant 0 : index
      %12 = vector.load %arg8[%c0_10, %c0_11] : memref<256x128xf32, #tpu.memory_space<vmem>>, vector<256x128xf32>
      %c0_12 = arith.constant 0 : index
      %c0_13 = arith.constant 0 : index
      %13 = vector.load %arg5[%c0_12, %c0_13] : memref<1x128xf32, #tpu.memory_space<vmem>>, vector<1x128xf32>
      %14 = vector.broadcast %13 : vector<1x128xf32> to vector<256x128xf32>
      %15 = arith.addf %12, %14 : vector<256x128xf32>
      %c0_14 = arith.constant 0 : index
      %c0_15 = arith.constant 0 : index
      %16 = vector.load %arg6[%c0_14, %c0_15] : memref<256x128xf32, #tpu.memory_space<vmem>>, vector<256x128xf32>
      %17 = arith.addf %15, %16 : vector<256x128xf32>
      %c0_16 = arith.constant 0 : index
      %c0_17 = arith.constant 0 : index
      %18 = vector.load %arg7[%c0_16, %c0_17] : memref<256x128xf32, #tpu.memory_space<vmem>>, vector<256x128xf32>
      tpu.vector_store %arg7[%c0_16, %c0_17], %17 {strides = array<i32>} : memref<256x128xf32, #tpu.memory_space<vmem>>, vector<256x128xf32>,
    } else {
    }
    return
  }
  func.func @transform_0(%arg0: i32, %arg1: i32, %arg2: i32) -> (i32, i32) {
    %c0_i32 = arith.constant 0 : i32
    return %arg0, %arg2 : i32, i32
  }
  func.func @transform_1(%arg0: i32, %arg1: i32, %arg2: i32) -> (i32, i32) {
    %c0_i32 = arith.constant 0 : i32
    return %arg2, %arg1 : i32, i32
  }
  func.func @transform_2(%arg0: i32, %arg1: i32, %arg2: i32) -> (i32, i32) {
    %c0_i32 = arith.constant 0 : i32
    %c0_i32_0 = arith.constant 0 : i32
    return %c0_i32, %arg1 : i32, i32
  }
  func.func @transform_3(%arg0: i32, %arg1: i32, %arg2: i32) -> (i32, i32) {
    %c0_i32 = arith.constant 0 : i32
    return %arg0, %arg1 : i32, i32
  }
  func.func @transform_4(%arg0: i32, %arg1: i32, %arg2: i32) -> (i32, i32) {
    %c0_i32 = arith.constant 0 : i32
    return %arg0, %arg1 : i32, i32
  }
}

</mosaic_0001>

<bundles_post_ra>
// kernel: tpu_custom_call.1
= control target key start
LH: loop header
LB: loop body
LE: loop exit
PB: predicated region body
PF: predicated region fallthrough
CT: control target
= control target key end

     0   :  { %s1993_s0 = inlined_call_operand.hbm [shape: bf16[512,128], index: 0, kind: input, shape index: {}]   ;;  %s1994_s1 = inlined_call_operand.hbm [shape: bf16[128,128], index: 1, kind: input, shape index: {}]   ;;  %s1995_s2 = inlined_call_operand.vmem [shape: f32[1,128], index: 2, kind: input, shape index: {}]   ;;  %s1996_s3 = inlined_call_operand.hbm [shape: f32[512,128], index: 3, kind: input, shape index: {}]   ;;  %s1997_s4 = inlined_call_operand.hbm [shape: f32[512,128], index: 4, kind: output, shape index: {}]  }
   0x1   :  { %2005 = sst [smem:[#allocation15_spill]] %s1993_s0 }
   0x2   :  { %2006 = sst [smem:[#allocation16_spill]] %s1996_s3 }
   0x3   :  { %9 = vsyncpa [#allocation4], 0 }
   0x4   :  { %11 = vsyncpa [#allocation4 + $0x1], 0 }
   0x5   :  { %12 = vsyncpa [#allocation7], 0 }
   0x6   :  { %13 = vsyncpa [#allocation5], 0 }
   0x7   :  { %15 = vsyncpa [#allocation5 + $0x1], 0  ;;  %s1592_s15 = smov 0   ;;  %s1594_s16 = smov 0  }
   0x8   :  { %s1596_s17 = smov 0   ;;  %s1598_s18 = smov 0  }
   0x9   :  { %s1600_s19 = smov 0   ;;  %s1602_s20 = smov 0  }
   0xa LB: > { %s40_s21 = sadd.s32 1, %s1551_s19  ;;  %s49_s22 = sadd.s32 1, %s1543_s17  ;;  %s1555_s20 = sphi %s1602_s20, %s21_s20   ;;  %s1551_s19 = sphi %s1600_s19, %s2031_s19   ;;  %s1547_s18 = sphi %s1598_s18, %s2030_s18   ;;  %s1543_s17 = sphi %s1596_s17, %s2029_s17   ;;  %s1539_s16 = sphi %s1594_s16, %s2028_s16   ;;  %s1535_s15 = sphi %s1592_s15, %s2027_s15  }
   0xb   : > { %p42_p0 = scmp.ge.s32.totalorder %s40_s21, 2  ;;  %p56_p1 = scmp.ne.s32.totalorder %s1543_s17, %s1539_s16 }
   0xc   : > { %p57_p2 = scmp.eq.s32.totalorder %s1555_s20, 0  ;;  %p1295_p6 = scmp.lt.s32.totalorder %s1555_s20, 2 }
   0xd   : > { %s2033_s21 = smov (%p42_p0, %s40_s21), 0  ;;  %s219_s25 = sand.u32 1, %s1555_s20  }
   0xe   : > { %2007 = sst [smem:[#allocation14_spill]] %s2033_s21  ;;  %p1632_p3 = por %p57_p2, %p56_p1 }
   0xf   : > { %s44_s24 = ssub.s32 %s1551_s19, %s2033_s21  ;;  %s221_s26 = sand.u32 1, %s1543_s17  }
  0x10   : > { %p47_p5 = scmp.eq.s32.totalorder %s44_s24, 0  ;;  %s1137_s28 = sshll.u32 %s221_s26, 7 }
  0x11   : > { %s1178_s29 = sshll.u32 %s1551_s19, 11  ;;  %s2009_s0 = sld [smem:[#allocation15_spill]] }
  0x12   : > { %s1643_s27 = scalar_select %p47_p5, %s1543_s17, %s49_s22  }
  0x13   : > { %s223_s7 = scalar_lea.vmem [#allocation3], %s1137_s28  ;;  %p1655_p7 = pnand %p1295_p6, %p1632_p3 }
  0x14   : > { %s231_s8 = sshll.u32 %s223_s7, 4  ;;  %s1659_s10 = sshll.u32 %s221_s26, 8  ;;  %s1651_s8 = int_to_ptr.vmem [resolvable:$true] %s231_s8 }
  0x15   : > { %s1661_s11 = scalar_lea.sflag [#allocation4], %s219_s25  ;;  %p1379_p9 = pneg %p1655_p7 }
  0x17   : > { %s1649_s6 = scalar_lea.hbm %s2009_s0, %s1178_s29  ;;  %s1382_s22 = scalar_lea.hbm %s2009_s0, 4096 }
  0x18   : > { %s1377_s12 = scalar_lea.hbm %s1649_s6, 2048  ;;  %p1383_p12 = scmp.lt.u32.totalorder %s1649_s6, %s2009_s0 }
  0x19   : > { %p1378_p8 = scmp.ne.s32.totalorder %s1649_s6, %s1377_s12  ;;  %p1384_p13 = scmp.lt.u32.totalorder %s1382_s22, %s1377_s12 }
  0x1a   : > { %p1386_p2 = scmp.lt.u32.totalorder %s1377_s12, %s1649_s6 }
  0x1b   : > { %p1380_p10 = pnand %p1379_p9, %p1378_p8  ;;  %p1385_p0 = por %p1384_p13, %p1383_p12 }
  0x1d   : > { %p1381_p11 = pneg %p1380_p10  ;;  %p1387_p3 = por %p1386_p2, %p1385_p0 }
  0x1f   : > { %p1388_p5 = pnand %p1387_p3, %p1381_p11 }
  0x21   : > { %1391 = shalt.err (!%p1388_p5)
}
  0x22   : > { %s1392_s25 = scalar_lea.vmem %s1651_s8, 2048  ;;  %s1557_s26 = smov [#allocation3]  }
  0x23   : > { %p1393_p6 = scmp.ne.s32.totalorder %s1651_s8, %s1392_s25  ;;  %s1397_s28 = sshll.u32 %s1557_s26, 4  ;;  %s1398_s28 = int_to_ptr.vmem [resolvable:$false] %s1397_s28 }
  0x24   : > { %s1399_s29 = scalar_lea.vmem %s1398_s28, 4096  ;;  %p1400_p4 = scmp.lt.s32.totalorder %s1651_s8, %s1398_s28 }
  0x25   : > { %p1395_p8 = pnand %p1393_p6, %p1379_p9  ;;  %p1401_p12 = scmp.lt.s32.totalorder %s1399_s29, %s1392_s25 }
  0x27   : > { %p1396_p10 = pneg %p1395_p8  ;;  %p1402_p13 = por %p1401_p12, %p1400_p4 }
  0x29   : > { %p1403_p0 = pnand %p1402_p13, %p1396_p10 }
  0x2b   : > { %1406 = shalt.err (!%p1403_p0)
}
  0x2c   : > { %s1998_s30 = smov 64   ;;  %s2001_s5 = smov 4  }
  0x2d   : > { %1286 = dma.hbm_to_vmem [thread:$0]  (!%p1655_p7), %s1649_s6, 2048, %s1651_s8, %s1661_s11, %s1998_s30, %s1998_s30, %s2001_s5  }
  0x2e   : > { %s245_s7 = scalar_lea.vmem [#allocation8], %s1659_s10  ;;  %s1694_s13 = sadd.s32 4294967295, %s1555_s20  }
  0x2f   : > { %s253_s12 = sshll.u32 %s245_s7, 4  ;;  %s1132_s14 = sadd.s32 4294967294, %s1555_s20   ;;  %s1732_s12 = int_to_ptr.vmem [resolvable:$true] %s253_s12 }
  0x30   : > { %p62_p4 = scmp.ne.s32.totalorder %s1539_s16, %s1535_s15  ;;  %p1999_p11 = scmp.eq.s32.totalorder %s1694_s13, 0 }
  0x31   : > { %p170_p2 = scmp.eq.s32.totalorder %s1694_s13, 1  ;;  %p176_p3 = scmp.eq.s32.totalorder %s1132_s14, 1 }
  0x32   : > { %p1703_p5 = por %p1999_p11, %p62_p4  ;;  %p1133_p6 = scmp.ge.s32.totalorder %s1555_s20, 1 }
  0x33   : > { %p1711_p8 = por %p170_p2, %p56_p1  ;;  %p1715_p10 = por %p176_p3, %p62_p4 }
  0x34   : > { %s2011_s22 = scalar_select %p1703_p5, 1, 0 }
  0x35   : > { %s2012_s6 = scalar_select %p1711_p8, 1, 0 }
  0x36   : > { %s2013_s8 = scalar_select %p1715_p10, 1, 0 }
  0x37   : > { %p183_p12 = scmp.lt.s32.totalorder %s1555_s20, 3  ;;  %s1179_s10 = sshll.u32 %s1551_s19, 12 }
  0x38   : > { %s1560_s24 = smov [#allocation6]   ;;  %s2015_s3 = sld [smem:[#allocation16_spill]] }
  0x39   : > { %p1721_p13 = pnand %p1133_p6, %p183_p12  ;;  %s199_s25 = sshll.u32 %s1560_s24, 4  ;;  %s1734_s25 = int_to_ptr.vmem [resolvable:$true] %s199_s25 }
  0x3b   : > { %s2014_s23 = scalar_select %p1721_p13, 1, 0 }
  0x3c   : > { %p1279_p1 = pneg %p1721_p13 }
  0x3e   : > { %s1728_s29 = scalar_lea.hbm %s2015_s3, %s1179_s10  ;;  %p1738_p0 = pnand %p1279_p1, %p1999_p11 }
  0x3f   : > { %s1407_s14 = scalar_lea.hbm %s1728_s29, 4096  ;;  %s1412_s26 = scalar_lea.hbm %s2015_s3, 8192 }
  0x40   : > { %p1408_p4 = scmp.ne.s32.totalorder %s1728_s29, %s1407_s14  ;;  %p1413_p6 = scmp.lt.u32.totalorder %s1728_s29, %s2015_s3 }
  0x41   : > { %p1414_p12 = scmp.lt.u32.totalorder %s1412_s26, %s1407_s14  ;;  %p1416_p1 = scmp.lt.u32.totalorder %s1407_s14, %s1728_s29 }
  0x42   : > { %p1410_p2 = pnand %p1408_p4, %p1379_p9 }
  0x43   : > { %p1415_p10 = por %p1414_p12, %p1413_p6 }
  0x44   : > { %p1411_p3 = pneg %p1410_p2 }
  0x45   : > { %p1417_p11 = por %p1416_p1, %p1415_p10 }
  0x47   : > { %p1418_p8 = pnand %p1417_p11, %p1411_p3 }
  0x49   : > { %1421 = shalt.err (!%p1418_p8)
}
  0x4a   : > { %s1422_s5 = scalar_lea.vmem %s1732_s12, 4096  ;;  %s1561_s10 = smov [#allocation8]  }
  0x4b   : > { %p1423_p4 = scmp.ne.s32.totalorder %s1732_s12, %s1422_s5  ;;  %s1427_s24 = sshll.u32 %s1561_s10, 4  ;;  %s1428_s24 = int_to_ptr.vmem [resolvable:$false] %s1427_s24 }
  0x4c   : > { %s1429_s30 = scalar_lea.vmem %s1428_s24, 8192  ;;  %p1430_p13 = scmp.lt.s32.totalorder %s1732_s12, %s1428_s24 }
  0x4d   : > { %p1425_p2 = pnand %p1423_p4, %p1379_p9  ;;  %p1431_p6 = scmp.lt.s32.totalorder %s1429_s30, %s1422_s5 }
  0x4f   : > { %p1426_p5 = pneg %p1425_p2  ;;  %p1432_p12 = por %p1431_p6, %p1430_p13 }
  0x51   : > { %p1433_p10 = pnand %p1432_p12, %p1426_p5 }
  0x53   : > { %1436 = shalt.err (!%p1433_p10)
}
  0x54   : > { %s1562_s14 = smov 128   ;;  %s1563_s26 = smov 8  }
  0x55   : > { %1289 = dma.hbm_to_vmem [thread:$0]  (!%p1655_p7), %s1728_s29, 4096, %s1732_s12, %s1661_s11, %s1562_s14, %s1562_s14, %s1563_s26  }
  0x56   : > { %s1437_s10 = scalar_lea.hbm %s1994_s1, 1024  ;;  %p1439_p11 = pneg %p1738_p0 }
  0x57   : > { %p1438_p9 = scmp.ne.s32.totalorder %s1994_s1, %s1437_s10  ;;  %p1444_p13 = scmp.lt.u32.totalorder %s1437_s10, %s1994_s1 }
  0x59   : > { %p1440_p5 = pnand %p1439_p11, %p1438_p9 }
  0x5b   : > { %p1441_p8 = pneg %p1440_p5 }
  0x5d   : > { %p1446_p3 = pnand %p1444_p13, %p1441_p8 }
  0x5f   : > { %1449 = shalt.err (!%p1446_p3)
}
  0x60   : > { %s1450_s9 = scalar_lea.vmem %s1734_s25, 1024  ;;  %p1458_p2 = scmp.lt.s32.totalorder %s1734_s25, %s1734_s25 }
  0x61   : > { %p1451_p7 = scmp.ne.s32.totalorder %s1734_s25, %s1450_s9  ;;  %p1459_p6 = scmp.lt.s32.totalorder %s1450_s9, %s1450_s9 }
  0x63   : > { %p1453_p1 = pnand %p1451_p7, %p1439_p11  ;;  %p1460_p12 = por %p1459_p6, %p1458_p2 }
  0x65   : > { %p1454_p4 = pneg %p1453_p1 }
  0x67   : > { %p1461_p10 = pnand %p1460_p12, %p1454_p4 }
  0x69   : > { %1464 = shalt.err (!%p1461_p10)
}
  0x6a   : > { %s2017_s0 = smov 4   ;;  %s2018_s3 = smov 64  }
  0x6b   : > { %1282 = dma.hbm_to_vmem [thread:$0]  (!%p1738_p0), %s1994_s1, 1024, %s1734_s25, [#allocation7], %s2018_s3, %s2018_s3, %s2017_s0  }
  0x6c   : > { %p2019_p9 = scmp.ne.s32.totalorder %s2014_s23, 0 }
  0x6d   : > { %s267_s12 = sand.u32 (!%p2019_p9), 1, %s1694_s13   ;;  %s1794_s29 = sand.u32 (!%p2019_p9), 1, %s1539_s16  }
  0x6e   : > { %265 = sbr.rel (%p2019_p9) target bundleno = 415 (0x19f), region = 36  ;;  %s1144_s30 = sshll.u32 (!%p2019_p9), %s1794_s29, 7 }
  0x6f   : > { %s268_s7 = scalar_lea.sflag (!%p2019_p9), [#allocation4], %s267_s12  ;;  %s1797_s14 = scalar_lea.vmem (!%p2019_p9), [#allocation3], %s1144_s30 }
  0x70   : > { %p2020_p11 = scmp.ne.s32.totalorder (!%p2019_p9), %s2011_s22, 0 }
  0x75   : > { %1518 = dma.done.wait (%p2020_p11), %s268_s7, 2048  }
  0x76   : > { %1520 = vsyncadd (%p2020_p11), %s268_s7, 4294965248  ;;  %p2021_p0 = scmp.eq.s32.totalorder %s1694_s13, 0 }
  0x78   : > { %1522 = dma.done.wait (%p2021_p0), [#allocation7], 1024   ;;  %p2022_p5 = pmov %p2021_p0 }
  0x79   : > { %s1146_s23 = sshll.u32 %s1794_s29, 8 }
  0x7a   : > { %1524 = vsyncadd (%p2022_p5), [#allocation7], 4294966272  ;;  %s1810_s25 = scalar_lea.vmem [#allocation8], %s1146_s23 }
  0x7b   : > { %1526 = dma.done.wait (%p2020_p11), %s268_s7, 4096  }
  0x7c   : > { %1528 = vsyncadd (%p2020_p11), %s268_s7, 4294963200  ;;  %v1353_v0 = vld [vmem:[#allocation6] sm:$0xff]   ;;  %v1354_v1 = vld [vmem:[#allocation6 + $0x8] sm:$0xff]   ;;  %s1855_s26 = scalar_lea.vmem [#allocation9], %s1146_s23  ;;  %s1180_s28 = sshll.u32 %s1547_s18, 12 }
  0x7d   : > { %1205 = vmatprep.subr.bf16.mxu0 %v1353_v0  ;;  %1253 = vmatprep.subr.bf16.mxu1 %v1353_v0  ;;  %v1355_v2 = vld [vmem:[#allocation6 + $0x10] sm:$0xff]   ;;  %v1356_v3 = vld [vmem:[#allocation6 + $0x18] sm:$0xff]   ;;  %v1361_v4 = vld [vmem:[%s1797_s14] sm:$0xff]   ;;  %s995_s10 = sshll.u32 %s1855_s26, 4  ;;  %s1936_s24 = scalar_lea.hbm %s1997_s4, %s1180_s28  ;;  %s1938_s10 = int_to_ptr.vmem [resolvable:$true] %s995_s10 }
  0x7e   : > { %1206 = vmatpush3.bf16.msra.mxu0 %v1353_v0  ;;  %1261 = vmatpush3.bf16.msra.mxu1 %v1353_v0  ;;  %v1362_v5 = vld [vmem:[%s1797_s14 + $0x40] sm:$0xff]   ;;  %v1358_v7 = vld [vmem:[#allocation6 + $0x28] sm:$0xff]   ;;  %v1359_v8 = vld [vmem:[#allocation6 + $0x30] sm:$0xff]   ;;  %s981_s9 = scalar_lea.sflag [#allocation5], %s1794_s29  ;;  %s1465_s0 = scalar_lea.vmem %s1938_s10, 4096 }
  0x7f   : > { %1207 = vmatprep.subr.bf16.mxu0 %v1354_v1  ;;  %1254 = vmatprep.subr.bf16.mxu1 %v1354_v1  ;;  %v1357_v6 = vld [vmem:[#allocation6 + $0x20] sm:$0xff]   ;;  %v1360_v9 = vld [vmem:[#allocation6 + $0x38] sm:$0xff]   ;;  %v1363_v10 = vld [vmem:[%s1797_s14 + $0x8] sm:$0xff]   ;;  %p1466_p8 = scmp.ne.s32.totalorder %s1938_s10, %s1465_s0  ;;  %p2023_p13 = scmp.ne.s32.totalorder %s2012_s6, 0 }
  0x80   : > { %1221 = vmatprep.mubr.bf16.mxu0 %v1361_v4  ;;  %1237 = vmatprep.mubr.bf16.mxu1 %v1362_v5  ;;  %v1364_v11 = vld [vmem:[%s1797_s14 + $0x48] sm:$0xff]   ;;  %v1365_v12 = vld [vmem:[%s1797_s14 + $0x10] sm:$0xff]   ;;  %v1367_v14 = vld [vmem:[%s1797_s14 + $0x18] sm:$0xff]   ;;  %s1564_s3 = smov [#allocation9]  }
  0x81   : > { %v1366_v13 = vld [vmem:[%s1797_s14 + $0x50] sm:$0xff]   ;;  %v1368_v15 = vld [vmem:[%s1797_s14 + $0x58] sm:$0xff]   ;;  %v1369_v16 = vld [vmem:[%s1797_s14 + $0x20] sm:$0xff]   ;;  %p1467_p3 = pnand %p1466_p8, %p2023_p13  ;;  %s1469_s21 = sshll.u32 %s1564_s3, 4  ;;  %s1470_s21 = int_to_ptr.vmem [resolvable:$false] %s1469_s21 }
  0x82   : > { %1208 = vmatpush3.bf16.msra.mxu0 %v1354_v1  ;;  %1262 = vmatpush3.bf16.msra.mxu1 %v1354_v1  ;;  %v1370_v17 = vld [vmem:[%s1797_s14 + $0x60] sm:$0xff]   ;;  %v1371_v18 = vld [vmem:[%s1797_s14 + $0x28] sm:$0xff]   ;;  %v1373_v20 = vld [vmem:[%s1797_s14 + $0x30] sm:$0xff]   ;;  %s1471_s11 = scalar_lea.vmem %s1470_s21, 8192  ;;  %p1472_p1 = scmp.lt.s32.totalorder %s1938_s10, %s1470_s21 }
  0x83   : > { %1209 = vmatprep.subr.bf16.mxu0 %v1355_v2  ;;  %1255 = vmatprep.subr.bf16.mxu1 %v1355_v2  ;;  %v1372_v19 = vld [vmem:[%s1797_s14 + $0x68] sm:$0xff]   ;;  %v1374_v21 = vld [vmem:[%s1797_s14 + $0x70] sm:$0xff]   ;;  %v1375_v22 = vld [vmem:[%s1797_s14 + $0x38] sm:$0xff]   ;;  %p1468_p7 = pneg %p1467_p3  ;;  %p1473_p4 = scmp.lt.s32.totalorder %s1471_s11, %s1465_s0 }
  0x84   : > { %v1376_v23 = vld [vmem:[%s1797_s14 + $0x78] sm:$0xff]   ;;  %v1835_v24 = vld [vmem:[%s1995_s2] ss:$0 sm:$0xff]  ;;  %v886_v26 = vld [vmem:[%s1810_s25 + $0x10] sm:$0xff] }
  0x85   : > { %v902_v28 = vld [vmem:[%s1810_s25 + $0x90] sm:$0xff]  ;;  %v884_v32 = vld [vmem:[%s1810_s25] sm:$0xff]  ;;  %v887_v38 = vld [vmem:[%s1810_s25 + $0x18] sm:$0xff]  ;;  %p1474_p2 = por %p1473_p4, %p1472_p1 }
  0x86   : > { %1210 = vmatpush3.bf16.msra.mxu0 %v1355_v2  ;;  %1263 = vmatpush3.bf16.msra.mxu1 %v1355_v2  ;;  %v900_v34 = vld [vmem:[%s1810_s25 + $0x80] sm:$0xff]  ;;  %v903_v40 = vld [vmem:[%s1810_s25 + $0x98] sm:$0xff]  ;;  %v885_v46 = vld [vmem:[%s1810_s25 + $0x8] sm:$0xff] }
  0x87   : > { %1211 = vmatprep.subr.bf16.mxu0 %v1356_v3  ;;  %1256 = vmatprep.subr.bf16.mxu1 %v1356_v3  ;;  %v901_v48 = vld [vmem:[%s1810_s25 + $0x88] sm:$0xff]  ;;  %v890_v58 = vld [vmem:[%s1810_s25 + $0x30] sm:$0xff]  ;;  %v888_v0 = vld [vmem:[%s1810_s25 + $0x20] sm:$0xff]  ;;  %p1475_p6 = pnand %p1474_p2, %p1468_p7 }
  0x88   : > { %v906_v60 = vld [vmem:[%s1810_s25 + $0xb0] sm:$0xff]  ;;  %v904_v2 = vld [vmem:[%s1810_s25 + $0xa0] sm:$0xff] }
  0x8a   : > { %1212 = vmatpush3.bf16.msra.mxu0 %v1356_v3  ;;  %1264 = vmatpush3.bf16.msra.mxu1 %v1356_v3 }
  0x8b   : > { %1213 = vmatprep.subr.bf16.mxu0 %v1357_v6  ;;  %1257 = vmatprep.subr.bf16.mxu1 %v1357_v6 }
  0x8e   : > { %1214 = vmatpush3.bf16.msra.mxu0 %v1357_v6  ;;  %1265 = vmatpush3.bf16.msra.mxu1 %v1357_v6  ;;  %v891_v6 = vld [vmem:[%s1810_s25 + $0x38] sm:$0xff] }
  0x8f   : > { %1215 = vmatprep.subr.bf16.mxu0 %v1358_v7  ;;  %1258 = vmatprep.subr.bf16.mxu1 %v1358_v7 }
  0x92   : > { %1216 = vmatpush3.bf16.msra.mxu0 %v1358_v7  ;;  %1266 = vmatpush3.bf16.msra.mxu1 %v1358_v7 }
  0x93   : > { %1217 = vmatprep.subr.bf16.mxu0 %v1359_v8  ;;  %1259 = vmatprep.subr.bf16.mxu1 %v1359_v8 }
  0x96   : > { %1218 = vmatpush3.bf16.msra.mxu0 %v1359_v8  ;;  %1267 = vmatpush3.bf16.msra.mxu1 %v1359_v8  ;;  %v907_v8 = vld [vmem:[%s1810_s25 + $0xb8] sm:$0xff] }
  0x97   : > { %1219 = vmatprep.subr.bf16.mxu0 %v1360_v9  ;;  %1260 = vmatprep.subr.bf16.mxu1 %v1360_v9 }
  0x9a   : > { %1220 = vmatpush3.bf16.msra.mxu0 %v1360_v9  ;;  %1268 = vmatpush3.bf16.msra.mxu1 %v1360_v9 }
  0x9d   : > { %1222 = vmatmul.mubr.bf16.vlgmr.msra.gmra.mrb[0].mxu0 %v1363_v10  ;;  %1238 = vmatmul.mubr.bf16.vlgmr.msra.gmra.mrb[0].mxu1 %v1364_v11 }
  0x9e   : > { %1225 = vmatprep.mubr.bf16.mxu0 %v1365_v12  ;;  %1241 = vmatprep.mubr.bf16.mxu1 %v1366_v13 }
  0xa5   : > { %1226 = vmatmul.mubr.bf16.gmra.mrb[4].mxu0 %v1367_v14  ;;  %1242 = vmatmul.mubr.bf16.gmra.mrb[4].mxu1 %v1368_v15  ;;  %v889_v14 = vld [vmem:[%s1810_s25 + $0x28] sm:$0xff] }
  0xa6   : > { %1229 = vmatprep.mubr.bf16.mxu0 %v1369_v16  ;;  %1245 = vmatprep.mubr.bf16.mxu1 %v1370_v17  ;;  %v905_v16 = vld [vmem:[%s1810_s25 + $0xa8] sm:$0xff] }
  0xad   : > { %1230 = vmatmul.mubr.bf16.gmra.mrb[8].mxu0 %v1371_v18  ;;  %1246 = vmatmul.mubr.bf16.gmra.mrb[8].mxu1 %v1372_v19 }
  0xae   : > { %1233 = vmatprep.mubr.bf16.mxu0 %v1373_v20  ;;  %1249 = vmatprep.mubr.bf16.mxu1 %v1374_v21 }
  0xb5   : > { %1234 = vmatmul.mubr.bf16.gmra.mrb[12].mxu0 %v1375_v22  ;;  %1250 = vmatmul.mubr.bf16.gmra.mrb[12].mxu1 %v1376_v23 }
 0x170   : > { %v1223_v25 = vpop.f32.mrb[0].mxu0  ;;  %v1239_v27 = vpop.f32.mrb[0].mxu1 }
 0x171   : > { %v854_v29 = vadd.f32 %v1223_v25, %v1835_v24  ;;  %v870_v30 = vadd.f32 %v1239_v27, %v1835_v24  ;;  %v619_v31 = vpop.f32.mrb[1].mxu0  ;;  %v683_v33 = vpop.f32.mrb[1].mxu1  ;;  %v894_v27 = vld [vmem:[%s1810_s25 + $0x50] sm:$0xff] }
 0x172   : > { %v852_v35 = vadd.f32 %v1835_v24, %v619_v31  ;;  %v868_v36 = vadd.f32 %v1835_v24, %v683_v33  ;;  %v1224_v37 = vpop.f32.mrb[2].mxu0  ;;  %v1240_v39 = vpop.f32.mrb[2].mxu1  ;;  %v892_v33 = vld [vmem:[%s1810_s25 + $0x40] sm:$0xff] }
 0x173   : > { %v918_v41 = vadd.f32 %v886_v26, %v854_v29  ;;  %v934_v42 = vadd.f32 %v902_v28, %v870_v30  ;;  %v855_v43 = vadd.f32 %v1224_v37, %v1835_v24  ;;  %v871_v44 = vadd.f32 %v1240_v39, %v1835_v24  ;;  %v622_v45 = vpop.f32.mrb[3].mxu0  ;;  %v686_v47 = vpop.f32.mrb[3].mxu1  ;;  %v910_v29 = vld [vmem:[%s1810_s25 + $0xd0] sm:$0xff]  ;;  %v895_v39 = vld [vmem:[%s1810_s25 + $0x58] sm:$0xff] }
 0x174   : > { %v916_v49 = vadd.f32 %v884_v32, %v852_v35  ;;  %v932_v50 = vadd.f32 %v900_v34, %v868_v36  ;;  %v853_v51 = vadd.f32 %v1835_v24, %v622_v45  ;;  %v869_v52 = vadd.f32 %v1835_v24, %v686_v47  ;;  %v908_v35 = vld [vmem:[%s1810_s25 + $0xc0] sm:$0xff]  ;;  %v893_v47 = vld [vmem:[%s1810_s25 + $0x48] sm:$0xff] }
 0x175   : > { %950 = vst [vmem:[%s1855_s26 + $0x10] sm:$0xff] %v918_v41  ;;  %966 = vst [vmem:[%s1855_s26 + $0x90] sm:$0xff] %v934_v42  ;;  %v919_v53 = vadd.f32 %v887_v38, %v855_v43  ;;  %v935_v54 = vadd.f32 %v903_v40, %v871_v44  ;;  %v911_v41 = vld [vmem:[%s1810_s25 + $0xd8] sm:$0xff] }
 0x176   : > { %948 = vst [vmem:[%s1855_s26] sm:$0xff] %v916_v49  ;;  %964 = vst [vmem:[%s1855_s26 + $0x80] sm:$0xff] %v932_v50  ;;  %v917_v55 = vadd.f32 %v885_v46, %v853_v51  ;;  %v933_v56 = vadd.f32 %v901_v48, %v869_v52  ;;  %v909_v49 = vld [vmem:[%s1810_s25 + $0xc8] sm:$0xff] }
 0x177   : > { %951 = vst [vmem:[%s1855_s26 + $0x18] sm:$0xff] %v919_v53  ;;  %967 = vst [vmem:[%s1855_s26 + $0x98] sm:$0xff] %v935_v54 }
 0x178   : > { %949 = vst [vmem:[%s1855_s26 + $0x8] sm:$0xff] %v917_v55  ;;  %965 = vst [vmem:[%s1855_s26 + $0x88] sm:$0xff] %v933_v56  ;;  %v1227_v57 = vpop.f32.mrb[4].mxu0  ;;  %v1243_v59 = vpop.f32.mrb[4].mxu1 }
 0x179   : > { %v858_v61 = vadd.f32 %v1227_v57, %v1835_v24  ;;  %v874_v62 = vadd.f32 %v1243_v59, %v1835_v24  ;;  %v635_v63 = vpop.f32.mrb[5].mxu0  ;;  %v699_v1 = vpop.f32.mrb[5].mxu1  ;;  %v898_v59 = vld [vmem:[%s1810_s25 + $0x70] sm:$0xff] }
 0x17a   : > { %v856_v3 = vadd.f32 %v1835_v24, %v635_v63  ;;  %v872_v4 = vadd.f32 %v1835_v24, %v699_v1  ;;  %v1228_v5 = vpop.f32.mrb[6].mxu0  ;;  %v1244_v7 = vpop.f32.mrb[6].mxu1  ;;  %v896_v1 = vld [vmem:[%s1810_s25 + $0x60] sm:$0xff] }
 0x17b   : > { %v922_v9 = vadd.f32 %v890_v58, %v858_v61  ;;  %v938_v10 = vadd.f32 %v906_v60, %v874_v62  ;;  %v859_v11 = vadd.f32 %v1228_v5, %v1835_v24  ;;  %v875_v12 = vadd.f32 %v1244_v7, %v1835_v24  ;;  %v638_v13 = vpop.f32.mrb[7].mxu0  ;;  %v702_v15 = vpop.f32.mrb[7].mxu1  ;;  %v914_v61 = vld [vmem:[%s1810_s25 + $0xf0] sm:$0xff]  ;;  %v899_v7 = vld [vmem:[%s1810_s25 + $0x78] sm:$0xff] }
 0x17c   : > { %v920_v17 = vadd.f32 %v888_v0, %v856_v3  ;;  %v936_v18 = vadd.f32 %v904_v2, %v872_v4  ;;  %v857_v19 = vadd.f32 %v1835_v24, %v638_v13  ;;  %v873_v20 = vadd.f32 %v1835_v24, %v702_v15  ;;  %v912_v3 = vld [vmem:[%s1810_s25 + $0xe0] sm:$0xff]  ;;  %v897_v15 = vld [vmem:[%s1810_s25 + $0x68] sm:$0xff] }
 0x17d   : > { %954 = vst [vmem:[%s1855_s26 + $0x30] sm:$0xff] %v922_v9  ;;  %970 = vst [vmem:[%s1855_s26 + $0xb0] sm:$0xff] %v938_v10  ;;  %v923_v21 = vadd.f32 %v891_v6, %v859_v11  ;;  %v939_v22 = vadd.f32 %v907_v8, %v875_v12  ;;  %v915_v9 = vld [vmem:[%s1810_s25 + $0xf8] sm:$0xff] }
 0x17e   : > { %952 = vst [vmem:[%s1855_s26 + $0x20] sm:$0xff] %v920_v17  ;;  %968 = vst [vmem:[%s1855_s26 + $0xa0] sm:$0xff] %v936_v18  ;;  %v921_v23 = vadd.f32 %v889_v14, %v857_v19  ;;  %v937_v25 = vadd.f32 %v905_v16, %v873_v20  ;;  %v913_v17 = vld [vmem:[%s1810_s25 + $0xe8] sm:$0xff] }
 0x17f   : > { %955 = vst [vmem:[%s1855_s26 + $0x38] sm:$0xff] %v923_v21  ;;  %971 = vst [vmem:[%s1855_s26 + $0xb8] sm:$0xff] %v939_v22 }
 0x180   : > { %953 = vst [vmem:[%s1855_s26 + $0x28] sm:$0xff] %v921_v23  ;;  %969 = vst [vmem:[%s1855_s26 + $0xa8] sm:$0xff] %v937_v25  ;;  %v1231_v26 = vpop.f32.mrb[8].mxu0  ;;  %v1247_v28 = vpop.f32.mrb[8].mxu1 }
 0x181   : > { %v862_v30 = vadd.f32 %v1231_v26, %v1835_v24  ;;  %v878_v31 = vadd.f32 %v1247_v28, %v1835_v24  ;;  %v651_v32 = vpop.f32.mrb[9].mxu0  ;;  %v715_v34 = vpop.f32.mrb[9].mxu1 }
 0x182   : > { %v860_v36 = vadd.f32 %v1835_v24, %v651_v32  ;;  %v876_v37 = vadd.f32 %v1835_v24, %v715_v34  ;;  %v1232_v38 = vpop.f32.mrb[10].mxu0  ;;  %v1248_v40 = vpop.f32.mrb[10].mxu1 }
 0x183   : > { %v926_v42 = vadd.f32 %v894_v27, %v862_v30  ;;  %v942_v43 = vadd.f32 %v910_v29, %v878_v31  ;;  %v863_v44 = vadd.f32 %v1232_v38, %v1835_v24  ;;  %v879_v45 = vadd.f32 %v1248_v40, %v1835_v24  ;;  %v654_v46 = vpop.f32.mrb[11].mxu0  ;;  %v718_v48 = vpop.f32.mrb[11].mxu1 }
 0x184   : > { %v924_v50 = vadd.f32 %v892_v33, %v860_v36  ;;  %v940_v51 = vadd.f32 %v908_v35, %v876_v37  ;;  %v861_v52 = vadd.f32 %v1835_v24, %v654_v46  ;;  %v877_v53 = vadd.f32 %v1835_v24, %v718_v48 }
 0x185   : > { %958 = vst [vmem:[%s1855_s26 + $0x50] sm:$0xff] %v926_v42  ;;  %974 = vst [vmem:[%s1855_s26 + $0xd0] sm:$0xff] %v942_v43  ;;  %v927_v54 = vadd.f32 %v895_v39, %v863_v44  ;;  %v943_v55 = vadd.f32 %v911_v41, %v879_v45 }
 0x186   : > { %956 = vst [vmem:[%s1855_s26 + $0x40] sm:$0xff] %v924_v50  ;;  %972 = vst [vmem:[%s1855_s26 + $0xc0] sm:$0xff] %v940_v51  ;;  %v925_v56 = vadd.f32 %v893_v47, %v861_v52  ;;  %v941_v57 = vadd.f32 %v909_v49, %v877_v53 }
 0x187   : > { %959 = vst [vmem:[%s1855_s26 + $0x58] sm:$0xff] %v927_v54  ;;  %975 = vst [vmem:[%s1855_s26 + $0xd8] sm:$0xff] %v943_v55 }
 0x188   : > { %957 = vst [vmem:[%s1855_s26 + $0x48] sm:$0xff] %v925_v56  ;;  %973 = vst [vmem:[%s1855_s26 + $0xc8] sm:$0xff] %v941_v57  ;;  %v1235_v58 = vpop.f32.mrb[12].mxu0  ;;  %v1251_v60 = vpop.f32.mrb[12].mxu1 }
 0x189   : > { %v866_v62 = vadd.f32 %v1235_v58, %v1835_v24  ;;  %v882_v63 = vadd.f32 %v1251_v60, %v1835_v24  ;;  %v667_v0 = vpop.f32.mrb[13].mxu0  ;;  %v731_v2 = vpop.f32.mrb[13].mxu1 }
 0x18a   : > { %v864_v4 = vadd.f32 %v1835_v24, %v667_v0  ;;  %v880_v5 = vadd.f32 %v1835_v24, %v731_v2  ;;  %v1236_v6 = vpop.f32.mrb[14].mxu0  ;;  %v1252_v8 = vpop.f32.mrb[14].mxu1 }
 0x18b   : > { %v930_v10 = vadd.f32 %v898_v59, %v866_v62  ;;  %v946_v11 = vadd.f32 %v914_v61, %v882_v63  ;;  %v867_v12 = vadd.f32 %v1236_v6, %v1835_v24  ;;  %v883_v13 = vadd.f32 %v1252_v8, %v1835_v24  ;;  %v670_v14 = vpop.f32.mrb[15].mxu0  ;;  %v734_v16 = vpop.f32.mrb[15].mxu1 }
 0x18c   : > { %v928_v18 = vadd.f32 %v896_v1, %v864_v4  ;;  %v944_v19 = vadd.f32 %v912_v3, %v880_v5  ;;  %v865_v20 = vadd.f32 %v1835_v24, %v670_v14  ;;  %v881_v21 = vadd.f32 %v1835_v24, %v734_v16 }
 0x18d   : > { %962 = vst [vmem:[%s1855_s26 + $0x70] sm:$0xff] %v930_v10  ;;  %978 = vst [vmem:[%s1855_s26 + $0xf0] sm:$0xff] %v946_v11  ;;  %v931_v22 = vadd.f32 %v899_v7, %v867_v12  ;;  %v947_v23 = vadd.f32 %v915_v9, %v883_v13 }
 0x18e   : > { %960 = vst [vmem:[%s1855_s26 + $0x60] sm:$0xff] %v928_v18  ;;  %976 = vst [vmem:[%s1855_s26 + $0xe0] sm:$0xff] %v944_v19  ;;  %v929_v25 = vadd.f32 %v897_v15, %v865_v20  ;;  %v945_v26 = vadd.f32 %v913_v17, %v881_v21 }
 0x18f   : > { %963 = vst [vmem:[%s1855_s26 + $0x78] sm:$0xff] %v931_v22  ;;  %979 = vst [vmem:[%s1855_s26 + $0xf8] sm:$0xff] %v947_v23 }
 0x190   : > { %961 = vst [vmem:[%s1855_s26 + $0x68] sm:$0xff] %v929_v25  ;;  %977 = vst [vmem:[%s1855_s26 + $0xe8] sm:$0xff] %v945_v26 }
 0x191   : > { %1478 = shalt.err (!%p1475_p6)
}
 0x192   : > { %s1479_s12 = scalar_lea.hbm %s1936_s24, 4096  ;;  %s1483_s14 = scalar_lea.hbm %s1997_s4, 8192 }
 0x193   : > { %p1480_p12 = scmp.ne.s32.totalorder %s1936_s24, %s1479_s12  ;;  %p1484_p11 = scmp.lt.u32.totalorder %s1936_s24, %s1997_s4 }
 0x194   : > { %p1485_p0 = scmp.lt.u32.totalorder %s1483_s14, %s1479_s12  ;;  %p1487_p8 = scmp.lt.u32.totalorder %s1479_s12, %s1936_s24 }
 0x195   : > { %p1481_p10 = pnand %p1480_p12, %p2023_p13 }
 0x196   : > { %p1486_p5 = por %p1485_p0, %p1484_p11 }
 0x197   : > { %p1482_p9 = pneg %p1481_p10 }
 0x198   : > { %p1488_p3 = por %p1487_p8, %p1486_p5 }
 0x19a   : > { %p1489_p7 = pnand %p1488_p3, %p1482_p9 }
 0x19c   : > { %1492 = shalt.err (!%p1489_p7)
}
 0x19d   : > { %s1565_s13 = smov 128   ;;  %s1566_s22 = smov 8  }
 0x19e   : > { %1277 = dma.vmem_to_hbm [thread:$0]  (%p2023_p13), %s1938_s10, 4096, %s1936_s24, %s981_s9, %s1565_s13, %s1565_s13, %s1566_s22  }
 0x19f PF: > { %s1010_s26 = sand.u32 1, %s1535_s15   ;;  %p2024_p1 = scmp.ne.s32.totalorder %s2013_s8, 0 }
 0x1a0   : > { %p2025_p4 = scmp.ge.s32.totalorder %s1555_s20, 2  ;;  %s1011_s28 = scalar_lea.sflag [#allocation5], %s1010_s26 }
 0x1a2   : > { %p1291_p2 = pnand %p2025_p4, %p2024_p1 }
 0x1a4   : > { %1530 = dma.done.wait (!%p1291_p2), %s1011_s28, 4096  }
 0x1a5   : > { %1532 = vsyncadd (!%p1291_p2), %s1011_s28, 4294963200  ;;  %s21_s20 = sadd.s32 1, %s1555_s20   ;;  %s2026_s6 = sld [smem:[#allocation14_spill]] }
 0x1a6   : > { %p18_p6 = scmp.ge.s32.totalorder %s21_s20, 4   ;;  %s2027_s15 = smov %s1539_s16 }
 0x1a7   : > { %s2028_s16 = smov %s1543_s17  ;;  %s2029_s17 = smov %s1643_s27 }
 0x1a8   : > { %s2030_s18 = smov %s1551_s19  ;;  %20 = sbr.rel (!%p18_p6) target bundleno = 10 (0xa), region = 108 }
 0x1ab   : > { %s2031_s19 = smov %s2026_s6 }
 0x1af   :  { %1016 = vsyncpa [#allocation4], 1 }
 0x1b0   :  { %1018 = vsyncpa [#allocation4 + $0x1], 1 }
 0x1b1   :  { %1019 = vsyncpa [#allocation7], 1 }
 0x1b2   :  { %1020 = vsyncpa [#allocation5], 1 }
 0x1b3   :  { %1022 = vsyncpa [#allocation5 + $0x1], 1 }

</bundles_post_ra>
